<compile_context>
chip_gen: v7x
topology: tpu7x:2x2x1
jax: 0.10.0
libtpu: 0.0.40
codegen_flags: <defaults>
</compile_context>

<pallas_src>
import functools

import jax
import jax.numpy as jnp
from jax import lax
from jax.experimental import pallas as pl
from jax.experimental.pallas import tpu as pltpu


def _two_tower_kernel(x_ref, w1_ref, b1_ref, w2_ref, b2_ref, embt_ref,
                      probs_out_ref, idx_out_ref, *, top_k):
    # ---- context tower: Linear -> ReLU -> Linear (tiny, MXU-padded; negligible) ----
    x = x_ref[...]                                                    # (B, Dc)
    h = jnp.dot(x, w1_ref[...], preferred_element_type=jnp.float32) + b1_ref[...]
    h = jnp.maximum(h, 0.0)                                           # ReLU
    c = jnp.dot(h, w2_ref[...], preferred_element_type=jnp.float32) + b2_ref[...]  # (B, E)

    # ---- logits against pre-transposed item embeddings: (B,E) @ (E,N) -> (B,N) ----
    logits = jnp.dot(c, embt_ref[...], preferred_element_type=jnp.float32)

    # ---- softmax numerator only; skip the (B, N)-wide divide ----
    m = jnp.max(logits, axis=1, keepdims=True)                        # (B, 1)
    e = jnp.exp(logits - m)                                           # (B, N) un-normalized
    denom = jnp.sum(e, axis=1, keepdims=True)                         # (B, 1)

    # ---- top-k on un-normalized values: one XLU max per step, mask by value ----
    B, N = e.shape
    work = e
    vals = []
    for _ in range(top_k):
        vmax = jnp.max(work, axis=1, keepdims=True)                   # (B, 1)
        vals.append(vmax)
        work = jnp.where(work == vmax, -jnp.inf, work)
    vals = jnp.concatenate(vals, axis=1)                              # (B, K), descending

    # ---- recover all K indices with one batched reduction (lowest index on ties) ----
    iota = lax.broadcasted_iota(jnp.int32, (B, top_k, N), 2)
    hit = e[:, None, :] == vals[:, :, None]                           # (B, K, N)
    idx = jnp.min(jnp.where(hit, iota, N), axis=2).astype(jnp.int32)  # (B, K)

    # ---- normalize only the K selected values; single store per output ----
    inv = pl.reciprocal(denom, approx=False)                          # exact: keeps 1e-5 tol
    probs_out_ref[...] = vals * inv
    idx_out_ref[...] = idx


def two_tower_first_stage_policy(x, w1, b1, w2, b2, item_embs, *, top_k):
    B, dim_context = x.shape
    num_items, emb_dim = item_embs.shape

    # One-time layout change outside the kernel hot path: (N, E) -> (E, N).
    emb_t = jnp.transpose(item_embs)

    kernel = functools.partial(_two_tower_kernel, top_k=top_k)
    vmem = pl.BlockSpec(memory_space=pltpu.MemorySpace.VMEM)

    flops = 2 * B * (dim_context * emb_dim + emb_dim * emb_dim + emb_dim * num_items)
    bytes_accessed = 4 * (x.size + w1.size + b1.size + w2.size + b2.size
                          + item_embs.size + 2 * B * top_k)

    # TODO(synk): for catalog-scale num_items, add an item-axis grid with online softmax,
    # a running top-k merge in VMEM scratch and (bf16) double-buffered embedding tiles so
    # the working set fits v7x's 64 MiB VMEM; unnecessary at these toy shapes.
    return pl.pallas_call(
        kernel,
        out_shape=(
            jax.ShapeDtypeStruct((B, top_k), jnp.float32),   # top_k_probs
            jax.ShapeDtypeStruct((B, top_k), jnp.int32),     # top_k_indices
        ),
        in_specs=[vmem] * 6,
        out_specs=(vmem, vmem),
        cost_estimate=pl.CostEstimate(
            flops=flops,
            transcendentals=B * num_items,
            bytes_accessed=bytes_accessed),
    )(x, w1, b1, w2, b2, emb_t)


if __name__ == "__main__":
    # Small shapes consistent with the module's forward.
    B = 8            # batch
    DIM_CONTEXT = 16
    EMB_DIM = 32
    NUM_ITEMS = 128
    TOP_K = 4

    key = jax.random.PRNGKey(0)
    k_x, k_w1, k_b1, k_w2, k_b2, k_emb = jax.random.split(key, 6)

    # Deterministic synthetic parameters (shapes from __init__).
    x = jax.random.normal(k_x, (B, DIM_CONTEXT), jnp.float32)
    w1 = jax.random.normal(k_w1, (DIM_CONTEXT, EMB_DIM), jnp.float32) * 0.1
    b1 = jax.random.normal(k_b1, (1, EMB_DIM), jnp.float32) * 0.1
    w2 = jax.random.normal(k_w2, (EMB_DIM, EMB_DIM), jnp.float32) * 0.1
    b2 = jax.random.normal(k_b2, (1, EMB_DIM), jnp.float32) * 0.1
    item_embs = jax.random.normal(k_emb, (NUM_ITEMS, EMB_DIM), jnp.float32)

    top_probs, top_idx = two_tower_first_stage_policy(
        x, w1, b1, w2, b2, item_embs, top_k=TOP_K)
    jax.block_until_ready((top_probs, top_idx))

    # Reference check against plain JAX.
    h_ref = jnp.maximum(x @ w1 + b1, 0.0)
    c_ref = h_ref @ w2 + b2
    probs_ref = jax.nn.softmax(c_ref @ item_embs.T, axis=1)
    ref_vals, ref_idx = lax.top_k(probs_ref, TOP_K)
    assert jnp.allclose(top_probs, ref_vals, atol=1e-5, rtol=1e-5)
    assert jnp.array_equal(top_idx, ref_idx.astype(jnp.int32))

    print("KERNEL_OK")
</pallas_src>

<mosaic_0001>
module attributes {stable_mosaic.version = 11 : i64} {
  func.func @_two_tower_kernel(%arg0: memref<8x16xf32, #tpu.memory_space<vmem>>, %arg1: memref<16x32xf32, #tpu.memory_space<vmem>>, %arg2: memref<1x32xf32, #tpu.memory_space<vmem>>, %arg3: memref<32x32xf32, #tpu.memory_space<vmem>>, %arg4: memref<1x32xf32, #tpu.memory_space<vmem>>, %arg5: memref<32x128xf32, #tpu.memory_space<vmem>>, %arg6: memref<8x4xf32, #tpu.memory_space<vmem>>, %arg7: memref<8x4xi32, #tpu.memory_space<vmem>>) attributes {dimension_semantics = [], scalar_prefetch = 0 : i64, scratch_operands = 0 : i64, tpu.core_type = #tpu.core_type<tc>} {
    %c0 = arith.constant 0 : index
    %c0_0 = arith.constant 0 : index
    %0 = vector.load %arg0[%c0, %c0_0] : memref<8x16xf32, #tpu.memory_space<vmem>>, vector<8x16xf32>
    %c0_1 = arith.constant 0 : index
    %c0_2 = arith.constant 0 : index
    %1 = vector.load %arg1[%c0_1, %c0_2] : memref<16x32xf32, #tpu.memory_space<vmem>>, vector<16x32xf32>
    %cst = arith.constant dense<0.000000e+00> : vector<8x32xf32>
    %2 = tpu.matmul %0, %1, %cst {dimension_numbers = #tpu.dot_dimension_numbers<[1], [0], [0], [1], [0, 0, 1, 1], [], []>} : vector<8x16xf32>, vector<16x32xf32>, vector<8x32xf32> -> vector<8x32xf32>
    %c0_3 = arith.constant 0 : index
    %c0_4 = arith.constant 0 : index
    %3 = vector.load %arg2[%c0_3, %c0_4] : memref<1x32xf32, #tpu.memory_space<vmem>>, vector<1x32xf32>
    %4 = vector.broadcast %3 : vector<1x32xf32> to vector<8x32xf32>
    %5 = arith.addf %2, %4 : vector<8x32xf32>
    %cst_5 = arith.constant 0.000000e+00 : f32
    %6 = vector.broadcast %cst_5 : f32 to vector<8x32xf32>
    %7 = arith.maximumf %5, %6 : vector<8x32xf32>
    %c0_6 = arith.constant 0 : index
    %c0_7 = arith.constant 0 : index
    %8 = vector.load %arg3[%c0_6, %c0_7] : memref<32x32xf32, #tpu.memory_space<vmem>>, vector<32x32xf32>
    %cst_8 = arith.constant dense<0.000000e+00> : vector<8x32xf32>
    %9 = tpu.matmul %7, %8, %cst_8 {dimension_numbers = #tpu.dot_dimension_numbers<[1], [0], [0], [1], [0, 0, 1, 1], [], []>} : vector<8x32xf32>, vector<32x32xf32>, vector<8x32xf32> -> vector<8x32xf32>
    %c0_9 = arith.constant 0 : index
    %c0_10 = arith.constant 0 : index
    %10 = vector.load %arg4[%c0_9, %c0_10] : memref<1x32xf32, #tpu.memory_space<vmem>>, vector<1x32xf32>
    %11 = vector.broadcast %10 : vector<1x32xf32> to vector<8x32xf32>
    %12 = arith.addf %9, %11 : vector<8x32xf32>
    %c0_11 = arith.constant 0 : index
    %c0_12 = arith.constant 0 : index
    %13 = vector.load %arg5[%c0_11, %c0_12] : memref<32x128xf32, #tpu.memory_space<vmem>>, vector<32x128xf32>
    %cst_13 = arith.constant dense<0.000000e+00> : vector<8x128xf32>
    %14 = tpu.matmul %12, %13, %cst_13 {dimension_numbers = #tpu.dot_dimension_numbers<[1], [0], [0], [1], [0, 0, 1, 1], [], []>} : vector<8x32xf32>, vector<32x128xf32>, vector<8x128xf32> -> vector<8x128xf32>
    %cst_14 = arith.constant dense<0xFF800000> : vector<8xf32>
    %15 = vector.multi_reduction <maximumf>, %14, %cst_14 [1] : vector<8x128xf32> to vector<8xf32>
    %16 = vector.shape_cast %15 : vector<8xf32> to vector<8x1xf32>
    %17 = vector.broadcast %16 : vector<8x1xf32> to vector<8x128xf32>
    %18 = arith.subf %14, %17 : vector<8x128xf32>
    %19 = math.exp %18 : vector<8x128xf32>
    %cst_15 = arith.constant dense<0.000000e+00> : vector<8xf32>
    %20 = vector.multi_reduction <add>, %19, %cst_15 [1] : vector<8x128xf32> to vector<8xf32>
    %21 = vector.shape_cast %20 : vector<8xf32> to vector<8x1xf32>
    %cst_16 = arith.constant dense<0xFF800000> : vector<8xf32>
    %22 = vector.multi_reduction <maximumf>, %19, %cst_16 [1] : vector<8x128xf32> to vector<8xf32>
    %23 = vector.shape_cast %22 : vector<8xf32> to vector<8x1xf32>
    %24 = vector.broadcast %23 : vector<8x1xf32> to vector<8x128xf32>
    %25 = arith.cmpf oeq, %19, %24 : vector<8x128xf32>
    %cst_17 = arith.constant 0xFF800000 : f32
    %26 = vector.broadcast %cst_17 : f32 to vector<8x128xf32>
    %27 = arith.select %25, %26, %19 : vector<8x128xi1>, vector<8x128xf32>
    %cst_18 = arith.constant dense<0xFF800000> : vector<8xf32>
    %28 = vector.multi_reduction <maximumf>, %27, %cst_18 [1] : vector<8x128xf32> to vector<8xf32>
    %29 = vector.shape_cast %28 : vector<8xf32> to vector<8x1xf32>
    %30 = vector.broadcast %29 : vector<8x1xf32> to vector<8x128xf32>
    %31 = arith.cmpf oeq, %27, %30 : vector<8x128xf32>
    %cst_19 = arith.constant 0xFF800000 : f32
    %32 = vector.broadcast %cst_19 : f32 to vector<8x128xf32>
    %33 = arith.select %31, %32, %27 : vector<8x128xi1>, vector<8x128xf32>
    %cst_20 = arith.constant dense<0xFF800000> : vector<8xf32>
    %34 = vector.multi_reduction <maximumf>, %33, %cst_20 [1] : vector<8x128xf32> to vector<8xf32>
    %35 = vector.shape_cast %34 : vector<8xf32> to vector<8x1xf32>
    %36 = vector.broadcast %35 : vector<8x1xf32> to vector<8x128xf32>
    %37 = arith.cmpf oeq, %33, %36 : vector<8x128xf32>
    %cst_21 = arith.constant 0xFF800000 : f32
    %38 = vector.broadcast %cst_21 : f32 to vector<8x128xf32>
    %39 = arith.select %37, %38, %33 : vector<8x128xi1>, vector<8x128xf32>
    %cst_22 = arith.constant dense<0xFF800000> : vector<8xf32>
    %40 = vector.multi_reduction <maximumf>, %39, %cst_22 [1] : vector<8x128xf32> to vector<8xf32>
    %41 = vector.shape_cast %40 : vector<8xf32> to vector<8x1xf32>
    %42 = tpu.concatenate %23, %29, %35, %41 in 1 : vector<8x1xf32>, vector<8x1xf32>, vector<8x1xf32>, vector<8x1xf32> -> vector<8x4xf32>
    %43 = tpu.iota {dimensions = array<i32: 2>} : vector<8x4x128xi32>
    %44 = vector.shape_cast %19 : vector<8x128xf32> to vector<8x1x128xf32>
    %45 = vector.shape_cast %42 : vector<8x4xf32> to vector<8x4x1xf32>
    %46 = vector.broadcast %44 : vector<8x1x128xf32> to vector<8x4x128xf32>
    %47 = vector.broadcast %45 : vector<8x4x1xf32> to vector<8x4x128xf32>
    %48 = arith.cmpf oeq, %46, %47 : vector<8x4x128xf32>
    %c128_i32 = arith.constant 128 : i32
    %49 = vector.broadcast %c128_i32 : i32 to vector<8x4x128xi32>
    %50 = arith.select %48, %43, %49 : vector<8x4x128xi1>, vector<8x4x128xi32>
    %cst_23 = arith.constant dense<2147483647> : vector<8x4xi32>
    %51 = vector.multi_reduction <minsi>, %50, %cst_23 [2] : vector<8x4x128xi32> to vector<8x4xi32>
    %52 = tpu.reciprocal %21 : vector<8x1xf32> -> vector<8x1xf32>
    %53 = vector.broadcast %52 : vector<8x1xf32> to vector<8x4xf32>
    %54 = arith.mulf %42, %53 : vector<8x4xf32>
    %c0_24 = arith.constant 0 : index
    %c0_25 = arith.constant 0 : index
    %55 = vector.load %arg6[%c0_24, %c0_25] : memref<8x4xf32, #tpu.memory_space<vmem>>, vector<8x4xf32>
    tpu.vector_store %arg6[%c0_24, %c0_25], %54 {strides = array<i32>} : memref<8x4xf32, #tpu.memory_space<vmem>>, vector<8x4xf32>,
    %c0_26 = arith.constant 0 : index
    %c0_27 = arith.constant 0 : index
    %56 = vector.load %arg7[%c0_26, %c0_27] : memref<8x4xi32, #tpu.memory_space<vmem>>, vector<8x4xi32>
    tpu.vector_store %arg7[%c0_26, %c0_27], %51 {strides = array<i32>} : memref<8x4xi32, #tpu.memory_space<vmem>>, vector<8x4xi32>,
    return
  }
}

</mosaic_0001>

<bundles_post_ra>
// kernel: tpu_custom_call.1
= control target key start
LH: loop header
LB: loop body
LE: loop exit
PB: predicated region body
PF: predicated region fallthrough
CT: control target
= control target key end

     0   :  { %13 = vsyncpa [#allocation3], 0  ;;  %s1073_s0 = inlined_call_operand.hbm [shape: f32[8,16], index: 0, kind: input, shape index: {}]   ;;  %s1074_s1 = inlined_call_operand.hbm [shape: f32[16,32], index: 1, kind: input, shape index: {}]   ;;  %s1075_s2 = inlined_call_operand.vmem [shape: f32[1,32], index: 2, kind: input, shape index: {}]   ;;  %s1076_s3 = inlined_call_operand.hbm [shape: f32[32,32], index: 3, kind: input, shape index: {}]   ;;  %s1077_s4 = inlined_call_operand.vmem [shape: f32[1,32], index: 4, kind: input, shape index: {}]   ;;  %s1078_s5 = inlined_call_operand.hbm [shape: f32[32,128], index: 5, kind: input, shape index: {}]   ;;  %s1079_s6 = inlined_call_operand.vmem [shape: f32[8,4], index: 6, kind: output, shape index: {0}]   ;;  %s1080_s7 = inlined_call_operand.vmem [shape: s32[8,4], index: 7, kind: output, shape index: {1}]  }
   0x1   :  { %14 = vsyncpa [#allocation5], 0 }
   0x2   :  { %15 = vsyncpa [#allocation8], 0  ;;  %s869_s24 = smov [#allocation4]   ;;  %s775_s28 = scalar_lea.hbm %s1074_s1, 256 }
   0x3   :  { %s31_s25 = sshll.u32 %s869_s24, 4  ;;  %p776_p0 = scmp.ne.s32.totalorder %s1074_s1, %s775_s28  ;;  %s32_s25 = int_to_ptr.vmem [resolvable:$true] %s31_s25 }
   0x4   :  { %p779_p1 = scmp.lt.u32.totalorder %s775_s28, %s1074_s1 }
   0x6   :  { %p781_p2 = pnand %p779_p1, %p776_p0 }
   0x8   :  { %784 = shalt.err (!%p781_p2)
}
   0x9   :  { %s785_s10 = scalar_lea.vmem %s32_s25, 256  ;;  %p790_p4 = scmp.lt.s32.totalorder %s32_s25, %s32_s25 }
   0xa   :  { %p786_p3 = scmp.ne.s32.totalorder %s32_s25, %s785_s10  ;;  %p791_p5 = scmp.lt.s32.totalorder %s785_s10, %s785_s10 }
   0xc   :  { %p792_p6 = por %p791_p5, %p790_p4 }
   0xe   :  { %p793_p7 = pnand %p792_p6, %p786_p3 }
  0x10   :  { %796 = shalt.err (!%p793_p7)
}
  0x11   :  { %s870_s11 = smov 128   ;;  %s871_s12 = smov 8  }
  0x12   :  { %37 = dma.hbm_to_vmem [thread:$0]  %s1074_s1, 256, %s32_s25, [#allocation5], %s870_s11, %s870_s11, %s871_s12  }
  0x13   :  { %s872_s15 = smov [#allocation2]   ;;  %s873_s17 = smov [#allocation6]  }
  0x14   :  { %s22_s16 = sshll.u32 %s872_s15, 4  ;;  %s45_s18 = sshll.u32 %s873_s17, 4  ;;  %s23_s16 = int_to_ptr.vmem [resolvable:$true] %s22_s16  ;;  %s46_s18 = int_to_ptr.vmem [resolvable:$true] %s45_s18 }
  0x15   :  { %s797_s21 = scalar_lea.hbm %s1073_s0, 128 }
  0x16   :  { %p798_p8 = scmp.ne.s32.totalorder %s1073_s0, %s797_s21  ;;  %p801_p9 = scmp.lt.u32.totalorder %s797_s21, %s1073_s0 }
  0x18   :  { %p803_p10 = pnand %p801_p9, %p798_p8 }
  0x1a   :  { %806 = shalt.err (!%p803_p10)
}
  0x1b   :  { %s807_s1 = scalar_lea.vmem %s23_s16, 128  ;;  %p812_p12 = scmp.lt.s32.totalorder %s23_s16, %s23_s16 }
  0x1c   :  { %p808_p11 = scmp.ne.s32.totalorder %s23_s16, %s807_s1  ;;  %p813_p13 = scmp.lt.s32.totalorder %s807_s1, %s807_s1 }
  0x1e   :  { %p814_p0 = por %p813_p13, %p812_p12 }
  0x20   :  { %p815_p1 = pnand %p814_p0, %p808_p11 }
  0x22   :  { %818 = shalt.err (!%p815_p1)
}
  0x23   :  { %25 = dma.hbm_to_vmem [thread:$0]  %s1073_s0, 128, %s23_s16, [#allocation3]  }
  0x24   :  { %s819_s30 = scalar_lea.hbm %s1076_s3, 512 }
  0x25   :  { %p820_p2 = scmp.ne.s32.totalorder %s1076_s3, %s819_s30  ;;  %p823_p3 = scmp.lt.u32.totalorder %s819_s30, %s1076_s3 }
  0x27   :  { %p825_p4 = pnand %p823_p3, %p820_p2 }
  0x29   :  { %828 = shalt.err (!%p825_p4)
}
  0x2a   :  { %s829_s14 = scalar_lea.vmem %s46_s18, 512  ;;  %p834_p6 = scmp.lt.s32.totalorder %s46_s18, %s46_s18 }
  0x2b   :  { %p830_p5 = scmp.ne.s32.totalorder %s46_s18, %s829_s14  ;;  %p835_p7 = scmp.lt.s32.totalorder %s829_s14, %s829_s14 }
  0x2d   :  { %p836_p8 = por %p835_p7, %p834_p6 }
  0x2f   :  { %p837_p9 = pnand %p836_p8, %p830_p5 }
  0x31   :  { %840 = shalt.err (!%p837_p9)
}
  0x32   :  { %51 = dma.hbm_to_vmem [thread:$0]  %s1076_s3, 512, %s46_s18, [#allocation5], %s870_s11, %s870_s11, %s871_s12  }
  0x33   :  { %s874_s16 = smov [#allocation7]   ;;  %s841_s21 = scalar_lea.hbm %s1078_s5, 512 }
  0x34   :  { %s59_s17 = sshll.u32 %s874_s16, 4  ;;  %p842_p10 = scmp.ne.s32.totalorder %s1078_s5, %s841_s21  ;;  %s60_s17 = int_to_ptr.vmem [resolvable:$true] %s59_s17 }
  0x35   :  { %p845_p11 = scmp.lt.u32.totalorder %s841_s21, %s1078_s5 }
  0x37   :  { %p847_p12 = pnand %p845_p11, %p842_p10 }
  0x39   :  { %850 = shalt.err (!%p847_p12)
}
  0x3a   :  { %s851_s1 = scalar_lea.vmem %s60_s17, 512  ;;  %p856_p0 = scmp.lt.s32.totalorder %s60_s17, %s60_s17 }
  0x3b   :  { %p852_p13 = scmp.ne.s32.totalorder %s60_s17, %s851_s1  ;;  %p857_p1 = scmp.lt.s32.totalorder %s851_s1, %s851_s1 }
  0x3d   :  { %p858_p2 = por %p857_p1, %p856_p0 }
  0x3f   :  { %p859_p3 = pnand %p858_p2, %p852_p13 }
  0x41   :  { %862 = shalt.err (!%p859_p3)
}
  0x42   :  { %65 = dma.hbm_to_vmem [thread:$0]  %s1078_s5, 512, %s60_s17, [#allocation8], %s870_s11, %s870_s11, %s871_s12  }
  0x43   :  { %863 = dma.done.wait [#allocation3], 128  }
  0x44   :  { %864 = vsyncadd [#allocation3], 4294967168 }
  0x45   :  { %865 = dma.done.wait [#allocation5], 768  }
  0x46   :  { %866 = vsyncadd [#allocation5], 4294966528 }
  0x47   :  { %867 = dma.done.wait [#allocation8], 512  }
  0x48   :  { %868 = vsyncadd [#allocation8], 4294966784  ;;  %v875_v0 = vmov 0.0|0.0   ;;  %vm876_vm0 = vmmov 0   ;;  %v877_v1 = vmov 0.0   ;;  %v79_v2 = vld [vmem:[#allocation4] sm:$0xff]  ;;  %v352_v39 = vlaneseq }
  0x49   :  { %746 = vmatprep.subr.bf16.mxu0 %v875_v0  ;;  %721 = vmatprep.mubr.msk.f32.mxu0 %vm876_vm0, %v877_v1  ;;  %v80_v3 = vld [vmem:[#allocation4 + $0x8] sm:$0xff]  ;;  %v163_v5 = vld [vmem:[#allocation6] sm:$0xff]  ;;  %v164_v6 = vld [vmem:[#allocation6 + $0x8] sm:$0xff]  ;;  %vm88_vm1 = vcmask 130048   ;;  %vm174_vm2 = vcmask 261120   ;;  %vm346_vm6 = vcmask 7168  }
  0x4a   :  { %749 = vmatprep.subr.bf16.mxu1 %v875_v0  ;;  %732 = vmatprep.mubr.msk.f32.mxu1 %vm876_vm0, %v877_v1  ;;  %v747_v4 = vpack.c.bf16 %v80_v3, %v79_v2  ;;  %v750_v7 = vpack.c.bf16 %v164_v6, %v163_v5  ;;  %v78_v8 = vld [vmem:[#allocation2] sm:$0xff]  ;;  %v165_v9 = vld [vmem:[#allocation6 + $0x10] sm:$0xff]  ;;  %v166_v10 = vld [vmem:[#allocation6 + $0x18] sm:$0xff]  ;;  %v990_v40 = vshrl.u32 %v352_v39, 7  ;;  %vm348_vm7 = vcmask 15360  }
  0x4b   :  { %v753_v11 = vpack.c.bf16 %v166_v10, %v165_v9  ;;  %v248_v12 = vld [vmem:[#allocation7] sm:$0xff]  ;;  %v249_v13 = vld [vmem:[#allocation7 + $0x8] sm:$0xff]  ;;  %v250_v20 = vld [vmem:[#allocation7 + $0x10] sm:$0xff]  ;;  %vm350_vm8 = vcmask 23552   ;;  %v878_v61 = vmov 1966171168  }
  0x4c   :  { %748 = vmatpush3.bf16.msra.mxu0 %v747_v4  ;;  %751 = vmatpush3.bf16.msra.mxu1 %v750_v7  ;;  %v756_v14 = vpack.c.bf16 %v249_v13, %v248_v12  ;;  %v699_v15 = vld [vmem:[%s1075_s2] ss:$0 sm:$0xff]  ;;  %v251_v21 = vld [vmem:[#allocation7 + $0x18] sm:$0xff]  ;;  %v413_v41 = vsub.s32 1, %v990_v40  ;;  %v994_v45 = vsub.s32 0, %v990_v40  ;;  %v441_v49 = vsub.s32 5, %v990_v40 }
  0x4d   :  { %755 = vmatprep.subr.bf16.mxu0 %v875_v0  ;;  %752 = vmatprep.subr.bf16.mxu1 %v875_v0  ;;  %v759_v22 = vpack.c.bf16 %v251_v21, %v250_v20  ;;  %v701_v23 = vld [vmem:[%s1077_s4] ss:$0 sm:$0xff]  ;;  %v420_v50 = vsub.s32 2, %v990_v40  ;;  %v455_v53 = vsub.s32 7, %v990_v40  ;;  %v427_v54 = vsub.s32 3, %v990_v40 }
  0x4e   :  { %v434_v57 = vsub.s32 4, %v990_v40  ;;  %v448_v59 = vsub.s32 6, %v990_v40  ;;  %v357_v62 = vunpack.c.l.s4 %v878_v61  ;;  %vm516_vm9 = vcmask 1043456  }
  0x4f   :  { %722 = vmatmul.mubr.msk.f32.vlgmr.msra.gmra.mrb[0].mxu0 %vm88_vm1, %v78_v8  ;;  %v1017_v8 = vand.u32 127, %v352_v39 }
  0x50   :  { %743 = vmatprep.mubr.msk.f32.mxu0 %vm876_vm0, %v877_v1  ;;  %754 = vmatpush3.bf16.msra.mxu1 %v753_v11  ;;  %v358_v63 = vunpack.c.0.s8 %v357_v62 }
  0x51   :  { %757 = vmatpush3.bf16.msra.mxu0 %v756_v14 }
  0x52   :  { %758 = vmatprep.subr.bf16.mxu0 %v875_v0  ;;  %v361_v0 = vsub.s32 %v358_v63, %v990_v40 }
  0x55   :  { %760 = vmatpush3.bf16.msra.mxu0 %v759_v22 }
 0x122   :  { %v158_v16 = vpop.f32.mrb[0].mxu0 }
 0x123   :  { %v159_v17 = vadd.f32 %v699_v15, %v158_v16  ;;  %v723_v18 = vpop.f32.mrb[1].mxu0 }
 0x125   :  { %v162_v19 = vmax.f32 %v159_v17, 0.0 }
 0x127   :  { %733 = vmatmul.mubr.msk.f32.vlgmr.msra.gmra.mrb[0].mxu1 %vm174_vm2, %v162_v19 }
 0x1fa   :  { %v244_v24 = vpop.f32.mrb[0].mxu1 }
 0x1fb   :  { %v245_v25 = vadd.f32 %v701_v23, %v244_v24  ;;  %v734_v26 = vpop.f32.mrb[1].mxu1 }
 0x1fd   :  { %744 = vmatmul.mubr.msk.f32.vlgmr.msra.gmra.mrb[2].mxu0 %vm174_vm2, %v245_v25 }
 0x2d0   :  { %v321_v27 = vpop.f32.mrb[2].mxu0 }
 0x2d1   :  { %325 = vmax.xlane.f32.xlu0 %v321_v27  ;;  %v745_v28 = vpop.f32.mrb[3].mxu0 }
 0x35e   :  { %v326_v29 = vpop.xlane.xlu0 %325 }
 0x35f   :  { %v327_v30 = vsub.f32 %v321_v27, %v326_v29 }
 0x361   :  { %v328_v31 = vmul.f32 1.442695, %v327_v30 }
 0x363   :  { %771 = vpow2.f32 %v328_v31 }
 0x36d   :  { %v985_v32 = vpop.eup %771 }
 0x36e   :  { %332 = vmax.xlane.f32.xlu0 %v985_v32  ;;  %v362_v1 = vrot.slane %v985_v32, %v361_v0  ;;  %v355_v2 = vcombine.high %v985_v32, %v985_v32 }
 0x370   :  { %v370_v3 = vcombine.high %v362_v1, %v362_v1  ;;  %v369_v4 = vrot.slane %v355_v2, %v361_v0  ;;  %v378_v5 = vrot.slane %v362_v1, %v361_v0 }
 0x372   :  { %v392_v6 = vrot.slane %v370_v3, %v361_v0  ;;  %v371_v7 = vcombine.high %v369_v4, %v369_v4  ;;  %v400_v9 = vcombine.high %v378_v5, %v378_v5  ;;  %v463_v11 = vrot.slane %v378_v5, %v994_v45 }
 0x374   :  { %v467_v10 = vrot.slane %v392_v6, %v994_v45  ;;  %v399_v12 = vrot.slane %v371_v7, %v361_v0  ;;  %v471_v17 = vrot.slane %v400_v9, %v994_v45  ;;  %v402_v18 = vcombine.high %v392_v6, %v392_v6 }
 0x376   :  { %v483_v21 = vrot.slane %v399_v12, %v994_v45  ;;  %v403_v22 = vcombine.high %v399_v12, %v399_v12 }
 0x3fb   :  { %v333_v33 = vpop.xlane.xlu0 %332 }
 0x3fc   :  { %vm334_vm3 = vcmp.eq.f32.partialorder %v985_v32, %v333_v33 }
 0x3fd   :  { %v335_v34 = vsel %vm334_vm3, -inf, %v985_v32 }
 0x3fe   :  { %336 = vmax.xlane.f32.xlu1 %v335_v34 }
 0x48b   :  { %v337_v35 = vpop.xlane.xlu1 %336 }
 0x48c   :  { %vm338_vm4 = vcmp.eq.f32.partialorder %v335_v34, %v337_v35  ;;  %v347_v42 = vsel %vm346_vm6, %v333_v33, %v337_v35  ;;  %v491_v33 = vrot.slane %v403_v22, %v994_v45  ;;  %v385_v35 = vrot.slane %v369_v4, %v361_v0 }
 0x48d   :  { %v339_v36 = vsel %vm338_vm4, -inf, %v335_v34  ;;  %v475_v34 = vrot.slane %v402_v18, %v994_v45 }
 0x48e   :  { %340 = vmax.xlane.f32.xlu1 %v339_v36 }
 0x51b   :  { %v341_v37 = vpop.xlane.xlu1 %340 }
 0x51c   :  { %vm342_vm5 = vcmp.eq.f32.partialorder %v339_v36, %v341_v37  ;;  %v349_v43 = vsel %vm348_vm7, %v347_v42, %v341_v37 }
 0x51d   :  { %v343_v38 = vsel %vm342_vm5, -inf, %v339_v36 }
 0x51e   :  { %344 = vmax.xlane.f32.xlu0 %v343_v38 }
 0x5ab   :  { %v345_v44 = vpop.xlane.xlu0 %344 }
 0x5ac   :  { %v996_v46 = vsel %vm350_vm8, %v349_v43, %v345_v44 }
 0x5ad   :  { %v414_v47 = vrot.slane %v996_v46, %v413_v41  ;;  %v407_v48 = vrot.slane %v996_v46, %v994_v45  ;;  %v442_v51 = vrot.slane %v996_v46, %v441_v49  ;;  %v421_v52 = vrot.slane %v996_v46, %v420_v50 }
 0x5ae   :  { %v456_v55 = vrot.slane %v996_v46, %v455_v53  ;;  %v428_v56 = vrot.slane %v996_v46, %v427_v54  ;;  %v435_v58 = vrot.slane %v996_v46, %v434_v57  ;;  %v449_v60 = vrot.slane %v996_v46, %v448_v59 }
 0x5af   :  { %416 = vbcast.lane.b32.xlu0 %v414_v47, 256  ;;  %409 = vbcast.lane.b32.xlu1 %v407_v48, 256  ;;  %v479_v47 = vrot.slane %v385_v35, %v994_v45  ;;  %v401_v48 = vcombine.high %v385_v35, %v385_v35 }
 0x5b1   :  { %v487_v57 = vrot.slane %v401_v48, %v994_v45 }
 0x5b3   :  { %444 = vbcast.lane.b32.xlu0 %v442_v51, 256  ;;  %423 = vbcast.lane.b32.xlu1 %v421_v52, 256 }
 0x5b7   :  { %458 = vbcast.lane.b32.xlu0 %v456_v55, 256  ;;  %430 = vbcast.lane.b32.xlu1 %v428_v56, 256 }
 0x5bb   :  { %437 = vbcast.lane.b32.xlu1 %v435_v58, 256 }
 0x5bf   :  { %451 = vbcast.lane.b32.xlu1 %v449_v60, 256 }
 0x621   :  { %v417_v13 = vpop.permute.xlu0 %416  ;;  %v410_v14 = vpop.permute.xlu1 %409 }
 0x622   :  { %vm501_vm10 = vcmp.eq.f32.partialorder %v467_v10, %v417_v13  ;;  %vm500_vm11 = vcmp.eq.f32.partialorder %v463_v11, %v410_v14 }
 0x623   :  { %v509_v15 = vsel %vm501_vm10, %v1017_v8, 128  ;;  %v508_v16 = vsel %vm500_vm11, %v1017_v8, 128  ;;  %vm639_vm10 = vcmask 31744   ;;  %vm673_vm11 = vcmask 1041409  }
 0x624   :  { %v1025_v19 = vsel %vm516_vm9, %v509_v15, 2147483647  ;;  %v1028_v20 = vsel %vm516_vm9, %v508_v16, 2147483647 }
 0x625   :  { %v445_v23 = vpop.permute.xlu0 %444  ;;  %v424_v24 = vpop.permute.xlu1 %423  ;;  %v519_v25 = vshra.s32 %v1028_v20, 16  ;;  %v534_v26 = vshra.s32 %v1025_v19, 16  ;;  %v533_v45 = vand.u32 65535, %v1025_v19  ;;  %v518_v4 = vand.u32 65535, %v1028_v20 }
 0x626   :  { %vm1033_vm12 = vcmp.eq.f32.partialorder %v483_v21, %v445_v23  ;;  %vm502_vm13 = vcmp.eq.f32.partialorder %v471_v17, %v424_v24 }
 0x627   :  { %v510_v28 = vsel %vm502_vm13, %v1017_v8, 128  ;;  %v521_v29 = vcvt.s32.f32 %v519_v25  ;;  %v536_v30 = vcvt.s32.f32 %v534_v26  ;;  %v513_v36 = vsel %vm1033_vm12, %v1017_v8, 128 }
 0x628   :  { %v547_v31 = vsel %vm516_vm9, %v510_v28, 2147483647  ;;  %v592_v43 = vsel %vm516_vm9, %v513_v36, 2147483647  ;;  %v535_v7 = vcvt.s32.f32 %v533_v45  ;;  %v520_v9 = vcvt.s32.f32 %v518_v4 }
 0x629   :  { %v459_v37 = vpop.permute.xlu0 %458  ;;  %v431_v38 = vpop.permute.xlu1 %430  ;;  %522 = vmin.xlane.f32.xlu1 %v521_v29  ;;  %537 = vmin.xlane.f32.xlu0 %v536_v30  ;;  %v549_v39 = vshra.s32 %v547_v31, 16  ;;  %v594_v54 = vshra.s32 %v592_v43, 16  ;;  %v548_v10 = vand.u32 65535, %v547_v31  ;;  %v593_v18 = vand.u32 65535, %v592_v43 }
 0x62a   :  { %vm507_vm14 = vcmp.eq.f32.partialorder %v491_v33, %v459_v37  ;;  %vm503_vm15 = vcmp.eq.f32.partialorder %v475_v34, %v431_v38  ;;  %v643_v43 = vsub.s32 %v1017_v8, %v990_v40  ;;  %vm675_vm12 = vcmask 1042434  }
 0x62b   :  { %v511_v41 = vsel %vm503_vm15, %v1017_v8, 128  ;;  %v551_v42 = vcvt.s32.f32 %v549_v39  ;;  %v515_v49 = vsel %vm507_vm14, %v1017_v8, 128  ;;  %v596_v62 = vcvt.s32.f32 %v594_v54 }
 0x62c   :  { %v562_v44 = vsel %vm516_vm9, %v511_v41, 2147483647  ;;  %v622_v55 = vsel %vm516_vm9, %v515_v49, 2147483647  ;;  %v550_v14 = vcvt.s32.f32 %v548_v10  ;;  %v595_v23 = vcvt.s32.f32 %v593_v18 }
 0x62d   :  { %v438_v50 = vpop.permute.xlu1 %437  ;;  %552 = vmin.xlane.f32.xlu0 %v551_v42  ;;  %v564_v51 = vshra.s32 %v562_v44, 16  ;;  %v624_v63 = vshra.s32 %v622_v55, 16  ;;  %v563_v15 = vand.u32 65535, %v562_v44  ;;  %v623_v26 = vand.u32 65535, %v622_v55 }
 0x62e   :  { %vm504_vm0 = vcmp.eq.f32.partialorder %v479_v47, %v438_v50  ;;  %vm677_vm13 = vcmask 1043459   ;;  %vm679_vm14 = vcmask 1044484   ;;  %vm681_vm15 = vcmask 1045509  }
 0x62f   :  { %v512_v52 = vsel %vm504_vm0, %v1017_v8, 128  ;;  %v566_v53 = vcvt.s32.f32 %v564_v51  ;;  %v626_v3 = vcvt.s32.f32 %v624_v63  ;;  %v565_v17 = vcvt.s32.f32 %v563_v15 }
 0x630   :  { %v577_v56 = vsel %vm516_vm9, %v512_v52, 2147483647  ;;  %v625_v33 = vcvt.s32.f32 %v623_v26  ;;  %vm683_vm0 = vcmask 1046534  }
 0x631   :  { %v452_v58 = vpop.permute.xlu1 %451  ;;  %567 = vmin.xlane.f32.xlu0 %v566_v53  ;;  %v579_v59 = vshra.s32 %v577_v56, 16  ;;  %v578_v19 = vand.u32 65535, %v577_v56 }
 0x632   :  { %vm506_vm1 = vcmp.eq.f32.partialorder %v487_v57, %v452_v58 }
 0x633   :  { %v514_v60 = vsel %vm506_vm1, %v1017_v8, 128  ;;  %v581_v61 = vcvt.s32.f32 %v579_v59  ;;  %v580_v24 = vcvt.s32.f32 %v578_v19  ;;  %vm685_vm1 = vcmask 1047559  }
 0x634   :  { %v607_v0 = vsel %vm516_vm9, %v514_v60, 2147483647 }
 0x635   :  { %582 = vmin.xlane.f32.xlu1 %v581_v61  ;;  %597 = vmin.xlane.f32.xlu0 %v596_v62  ;;  %v609_v1 = vshra.s32 %v607_v0, 16  ;;  %v608_v25 = vand.u32 65535, %v607_v0 }
 0x637   :  { %v611_v2 = vcvt.s32.f32 %v609_v1  ;;  %v610_v31 = vcvt.s32.f32 %v608_v25 }
 0x639   :  { %612 = vmin.xlane.f32.xlu1 %v611_v2  ;;  %627 = vmin.xlane.f32.xlu0 %v626_v3 }
 0x63d   :  { %330 = vadd.xlane.f32.xlu1 %v985_v32 }
 0x6b6   :  { %v523_v5 = vpop.xlane.xlu1 %522  ;;  %v538_v6 = vpop.xlane.xlu0 %537 }
 0x6b7   :  { %vm539_vm2 = vcmp.eq.f32.partialorder %v536_v30, %v538_v6  ;;  %vm524_vm3 = vcmp.eq.f32.partialorder %v521_v29, %v523_v5  ;;  %v529_v39 = vcvt.f32.s32 %v523_v5  ;;  %v544_v41 = vcvt.f32.s32 %v538_v6 }
 0x6b8   :  { %v540_v11 = vsel %vm539_vm2, %v535_v7, inf  ;;  %v525_v12 = vsel %vm524_vm3, %v520_v9, inf }
 0x6b9   :  { %541 = vmin.xlane.f32.xlu1 %v540_v11  ;;  %526 = vmin.xlane.f32.xlu0 %v525_v12  ;;  %v530_v48 = vshll.u32 %v529_v39, 16  ;;  %v545_v49 = vshll.u32 %v544_v41, 16 }
 0x6ba   :  { %v553_v13 = vpop.xlane.xlu0 %552 }
 0x6bb   :  { %vm554_vm4 = vcmp.eq.f32.partialorder %v551_v42, %v553_v13  ;;  %v559_v42 = vcvt.f32.s32 %v553_v13 }
 0x6bc   :  { %v555_v32 = vsel %vm554_vm4, %v550_v14, inf }
 0x6bd   :  { %556 = vmin.xlane.f32.xlu0 %v555_v32 }
 0x6be   :  { %v568_v16 = vpop.xlane.xlu0 %567 }
 0x6bf   :  { %vm569_vm5 = vcmp.eq.f32.partialorder %v566_v53, %v568_v16  ;;  %v574_v55 = vcvt.f32.s32 %v568_v16 }
 0x6c0   :  { %v570_v20 = vsel %vm569_vm5, %v565_v17, inf }
 0x6c1   :  { %571 = vmin.xlane.f32.xlu1 %v570_v20  ;;  %v575_v8 = vshll.u32 %v574_v55, 16 }
 0x6c2   :  { %v583_v21 = vpop.xlane.xlu1 %582  ;;  %v1058_v22 = vpop.xlane.xlu0 %597 }
 0x6c3   :  { %vm599_vm6 = vcmp.eq.f32.partialorder %v596_v62, %v1058_v22  ;;  %vm584_vm7 = vcmp.eq.f32.partialorder %v581_v61, %v583_v21  ;;  %v589_v61 = vcvt.f32.s32 %v583_v21  ;;  %v604_v62 = vcvt.f32.s32 %v1058_v22 }
 0x6c4   :  { %v600_v27 = vsel %vm599_vm6, %v595_v23, inf  ;;  %v585_v28 = vsel %vm584_vm7, %v580_v24, inf }
 0x6c5   :  { %601 = vmin.xlane.f32.xlu1 %v600_v27  ;;  %586 = vmin.xlane.f32.xlu0 %v585_v28  ;;  %v605_v7 = vshll.u32 %v604_v62, 16 }
 0x6c6   :  { %v613_v29 = vpop.xlane.xlu1 %612  ;;  %v628_v30 = vpop.xlane.xlu0 %627 }
 0x6c7   :  { %vm614_vm8 = vcmp.eq.f32.partialorder %v611_v2, %v613_v29  ;;  %vm629_vm9 = vcmp.eq.f32.partialorder %v626_v3, %v628_v30  ;;  %v590_v3 = vshll.u32 %v589_v61, 16  ;;  %v619_v45 = vcvt.f32.s32 %v613_v29 }
 0x6c8   :  { %v615_v34 = vsel %vm614_vm8, %v610_v31, inf  ;;  %v630_v35 = vsel %vm629_vm9, %v625_v33, inf  ;;  %v634_v4 = vcvt.f32.s32 %v628_v30 }
 0x6c9   :  { %616 = vmin.xlane.f32.xlu0 %v615_v34  ;;  %631 = vmin.xlane.f32.xlu1 %v630_v35  ;;  %v620_v15 = vshll.u32 %v619_v45, 16 }
 0x6ca   :  { %v331_v36 = vpop.xlane.xlu1 %330  ;;  %v635_v32 = vshll.u32 %v634_v4, 16 }
 0x6cb   :  { %773 = vrcp.f32 %v331_v36 }
 0x6d5   :  { %v774_v37 = vpop.eup %773 }
 0x6d6   :  { %v638_v38 = vmul.f32 %v774_v37, %v996_v46  ;;  %v560_v46 = vshll.u32 %v559_v42, 16 }
 0x6d8   :  { %640 = vst.msk [vmem:[%s1079_s6] sm:$0xff] %vm639_vm10, %v638_v38 }
 0x746   :  { %v542_v44 = vpop.xlane.xlu1 %541  ;;  %v527_v47 = vpop.xlane.xlu0 %526 }
 0x747   :  { %v543_v50 = vcvt.f32.s32 %v542_v44  ;;  %v528_v51 = vcvt.f32.s32 %v527_v47 }
 0x749   :  { %v546_v52 = vadd.s32 %v545_v49, %v543_v50  ;;  %v531_v53 = vadd.s32 %v530_v48, %v528_v51 }
 0x74a   :  { %v557_v54 = vpop.xlane.xlu0 %556 }
 0x74b   :  { %v648_v56 = vrot.slane %v546_v52, %v643_v43  ;;  %v644_v57 = vrot.slane %v531_v53, %v643_v43  ;;  %v558_v58 = vcvt.f32.s32 %v557_v54 }
 0x74d   :  { %v674_v59 = vsel %vm673_vm11, %v648_v56, %v644_v57  ;;  %v561_v60 = vadd.s32 %v560_v46, %v558_v58 }
 0x74e   :  { %v572_v40 = vpop.xlane.xlu1 %571 }
 0x74f   :  { %v652_v63 = vrot.slane %v561_v60, %v643_v43  ;;  %v573_v0 = vcvt.f32.s32 %v572_v40 }
 0x751   :  { %v676_v1 = vsel %vm675_vm12, %v652_v63, %v674_v59  ;;  %v576_v2 = vadd.s32 %v575_v8, %v573_v0 }
 0x752   :  { %v602_v5 = vpop.xlane.xlu1 %601  ;;  %v587_v6 = vpop.xlane.xlu0 %586 }
 0x753   :  { %v656_v9 = vrot.slane %v576_v2, %v643_v43  ;;  %v603_v10 = vcvt.f32.s32 %v602_v5  ;;  %v588_v11 = vcvt.f32.s32 %v587_v6 }
 0x755   :  { %v678_v12 = vsel %vm677_vm13, %v656_v9, %v676_v1  ;;  %v606_v13 = vadd.s32 %v605_v7, %v603_v10  ;;  %v591_v14 = vadd.s32 %v590_v3, %v588_v11 }
 0x756   :  { %v617_v16 = vpop.xlane.xlu0 %616  ;;  %v632_v17 = vpop.xlane.xlu1 %631 }
 0x757   :  { %v664_v18 = vrot.slane %v606_v13, %v643_v43  ;;  %v660_v19 = vrot.slane %v591_v14, %v643_v43  ;;  %v618_v20 = vcvt.f32.s32 %v617_v16  ;;  %v633_v21 = vcvt.f32.s32 %v632_v17 }
 0x759   :  { %v680_v22 = vsel %vm679_vm14, %v660_v19, %v678_v12  ;;  %v621_v23 = vadd.s32 %v620_v15, %v618_v20  ;;  %v636_v24 = vadd.s32 %v635_v32, %v633_v21 }
 0x75a   :  { %v682_v25 = vsel %vm681_vm15, %v664_v18, %v680_v22 }
 0x75b   :  { %v668_v26 = vrot.slane %v621_v23, %v643_v43  ;;  %v672_v27 = vrot.slane %v636_v24, %v643_v43 }
 0x75d   :  { %v684_v28 = vsel %vm683_vm0, %v668_v26, %v682_v25 }
 0x75e   :  { %v686_v29 = vsel %vm685_vm1, %v672_v27, %v684_v28 }
 0x75f   :  { %687 = vst.msk [vmem:[%s1080_s7] sm:$0xff] %vm639_vm10, %v686_v29 }
 0x760   :  { %696 = vsyncpa [#allocation3], 1 }
 0x761   :  { %697 = vsyncpa [#allocation5], 1 }
 0x762   :  { %698 = vsyncpa [#allocation8], 1 }

</bundles_post_ra>
